<compile_context>
chip_gen: v7x
topology: tpu7x:2x2x1
jax: 0.10.0
libtpu: 0.0.40
codegen_flags: <defaults>
</compile_context>

<pallas_src>
import jax
import jax.numpy as jnp
from jax.experimental import pallas as pl
from jax.experimental.pallas import tpu as pltpu


LANE = 128


def _round_up(n: int, m: int) -> int:
    return ((n + m - 1) // m) * m


def _cdiv(a: int, b: int) -> int:
    return -(-a // b)


def _pick_vmem_limit() -> int:
    """VMEM limit for CompilerParams, derived from the chip (v5e/v6e: 128 MiB, v7x: 64 MiB)."""
    try:
        cap = int(pltpu.get_tpu_info().vmem_capacity_bytes)
    except Exception:
        cap = 64 * 1024 * 1024          # conservative fallback: v7x physical VMEM
    return min(cap * 3 // 4, 96 * 1024 * 1024)


def _choose_block_rows(B, TK, num_k, Hp, vmem_limit, max_block_rows=None):
    """Pick the batch tile TM: >= ~2 MiB of x per grid step, capped by the VMEM budget."""
    target_x_bytes = 2 * 1024 * 1024
    tm = _round_up(max(8, target_x_bytes // (4 * TK)), 8)

    # VMEM accounting (f32): x double-buffered, (TM, Hp) accumulator scratch, w1 block(s),
    # tiny out blocks, plus headroom for Mosaic internal scratch.
    w1_bufs = 1 if num_k == 1 else 2
    fixed = w1_bufs * TK * Hp * 4 + 4 * Hp * 4 + (2 << 20)
    per_row = 2 * TK * 4 + Hp * 4 + 2 * 4
    budget = max(vmem_limit - fixed, per_row * 8)
    tm = min(tm, max(8, (budget // per_row) // 8 * 8))

    if max_block_rows is not None:
        tm = min(tm, max(8, _round_up(max_block_rows, 8)))
    tm = min(tm, _round_up(B, 8))

    # Keep >= 2 batch steps for large batches so both v7x TensorCores get work.
    if B > 8192 and _cdiv(B, tm) < 2:
        tm = _round_up(_cdiv(B, 2), 8)
    return tm


def _make_kernel(use_mxu_proj: bool):
    def kernel(x_ref, w1_ref, b1_ref, w2_ref, b2_ref, o_ref, acc_ref):
        k = pl.program_id(1)

        @pl.when(k == 0)
        def _():
            acc_ref[...] = jnp.zeros_like(acc_ref)

        # Layer 1 partial product on the MXU with f32 accumulation.
        acc_ref[...] += jnp.dot(x_ref[...], w1_ref[...],
                                preferred_element_type=jnp.float32)

        @pl.when(k == pl.num_programs(1) - 1)
        def _():
            h = jnp.maximum(acc_ref[...] + b1_ref[...], 0.0)   # bias + ReLU on the VPU
            b2 = b2_ref[0, 0]                                  # SMEM scalar
            if use_mxu_proj:
                # Small D: MXU has slack, avoid saturating the XLU with a lane reduce.
                o = jnp.dot(h, w2_ref[...], preferred_element_type=jnp.float32) + b2
            else:
                # Large D: VPU multiply + lane reduce; padded hidden lanes contribute 0.
                o = jnp.sum(h * w2_ref[...], axis=-1, keepdims=True) + b2
            o_ref[...] = o.astype(o_ref.dtype)

    return kernel


def prepare_params(w1, b1, w2, b2, *, tk_max=1024):
    """One-time weight prep (outside the per-call path): hidden pad 100->128, D tiling
    decision for large in_features, and the layer-2 weight layout choice."""
    D, H = w1.shape
    O = w2.shape[1]
    Hp = _round_up(H, LANE)
    if Hp != H:                                   # exact zero padding
        w1 = jnp.pad(w1, ((0, 0), (0, Hp - H)))
        b1 = jnp.pad(b1, ((0, 0), (0, Hp - H)))
        w2 = jnp.pad(w2, ((0, Hp - H), (0, 0)))

    if D <= tk_max:                               # monolithic (D, Hp) w1 block
        TK, Dp = D, D
    else:                                         # stream w1 along D in (TK, Hp) tiles
        TK = 512
        Dp = _round_up(D, TK)
        w1 = jnp.pad(w1, ((0, Dp - D), (0, 0)))   # exact zero padding along K

    use_mxu_proj = D <= 256
    w2_op = w2 if use_mxu_proj else jnp.transpose(w2)   # (Hp, O) column or (O, Hp) row
    b2 = jnp.reshape(b2, (1, 1)).astype(jnp.float32)

    return dict(w1=w1, b1=b1, w2=w2_op, b2=b2,
                D=D, Dp=Dp, TK=TK, Hp=Hp, O=O, use_mxu_proj=use_mxu_proj)


def torch_mlp_forward(x, params, *, max_block_rows=None):
    """Fused forward of Sequential(Linear(D,100), ReLU, Linear(100,1)). x: (B, D) f32."""
    B, D = x.shape
    assert D == params["D"], "in_features mismatch with prepared params"
    Dp, TK, Hp, O = params["Dp"], params["TK"], params["Hp"], params["O"]
    use_mxu_proj = params["use_mxu_proj"]

    if Dp != D:                                   # only the huge-D (K-tiled) path pads x
        x = jnp.pad(x, ((0, 0), (0, Dp - D)))
    num_k = Dp // TK

    vmem_limit = _pick_vmem_limit()
    TM = _choose_block_rows(B, TK, num_k, Hp, vmem_limit, max_block_rows)
    grid = (_cdiv(B, TM), num_k)

    # Grid-invariant operands are single-buffered; w1 is only invariant when num_k == 1.
    w1_kwargs = dict(pipeline_mode=pl.Buffered(1)) if num_k == 1 else {}
    w2_shape = (Hp, O) if use_mxu_proj else (O, Hp)

    in_specs = [
        pl.BlockSpec((TM, TK), lambda i, k: (i, k)),                         # x streamed
        pl.BlockSpec((TK, Hp), lambda i, k: (k, 0), **w1_kwargs),            # w1
        pl.BlockSpec((1, Hp), lambda i, k: (0, 0),
                     pipeline_mode=pl.Buffered(1)),                          # b1
        pl.BlockSpec(w2_shape, lambda i, k: (0, 0),
                     pipeline_mode=pl.Buffered(1)),                          # w2
        pl.BlockSpec(memory_space=pltpu.MemorySpace.SMEM),                   # b2 scalar
    ]

    out = pl.pallas_call(
        _make_kernel(use_mxu_proj),
        out_shape=jax.ShapeDtypeStruct((B, O), jnp.float32),
        grid=grid,
        in_specs=in_specs,
        out_specs=pl.BlockSpec((TM, O), lambda i, k: (i, 0)),
        scratch_shapes=[pltpu.VMEM((TM, Hp), jnp.float32)],
        compiler_params=pltpu.CompilerParams(
            dimension_semantics=("parallel", "arbitrary"),
            vmem_limit_bytes=vmem_limit,
        ),
    )(x, params["w1"], params["b1"], params["w2"], params["b2"])
    return out


def init_params(key, in_features, hidden=100, out_features=1):
    """Deterministic PyTorch-style (Kaiming-uniform-ish) Linear init, stored as (in, out)."""
    k1, k2, k3, k4 = jax.random.split(key, 4)
    bound1 = 1.0 / jnp.sqrt(in_features)
    bound2 = 1.0 / jnp.sqrt(hidden)
    w1 = jax.random.uniform(k1, (in_features, hidden), jnp.float32, -bound1, bound1)
    b1 = jax.random.uniform(k2, (1, hidden), jnp.float32, -bound1, bound1)
    w2 = jax.random.uniform(k3, (hidden, out_features), jnp.float32, -bound2, bound2)
    b2 = jax.random.uniform(k4, (1, out_features), jnp.float32, -bound2, bound2)
    return w1, b1, w2, b2


def _ref_forward(x, w1, b1, w2, b2):
    return jnp.maximum(x @ w1 + b1, 0.0) @ w2 + b2


if __name__ == "__main__":
    key = jax.random.PRNGKey(0)
    kx1, kx2, kx3, kp1, kp2 = jax.random.split(key, 5)

    # Case 1: small D -> single K step, MXU layer-2 projection.
    B1, D1 = 8, 32
    x1 = jax.random.normal(kx1, (B1, D1), jnp.float32)
    w1, b1, w2, b2 = init_params(kp1, D1)
    p1 = prepare_params(w1, b1, w2, b2)
    out1 = jax.block_until_ready(torch_mlp_forward(x1, p1))
    ref1 = _ref_forward(x1, w1, b1, w2, b2)
    assert out1.shape == (B1, 1)
    assert jnp.allclose(out1, ref1, atol=1e-4, rtol=1e-4), "case 1 mismatch vs reference"

    # Case 2: ragged batch (B % TM != 0) -> masked edge block, no host-side batch padding.
    B2 = 20
    x2 = jax.random.normal(kx2, (B2, D1), jnp.float32)
    out2 = jax.block_until_ready(torch_mlp_forward(x2, p1, max_block_rows=8))
    ref2 = _ref_forward(x2, w1, b1, w2, b2)
    assert out2.shape == (B2, 1)
    assert jnp.allclose(out2, ref2, atol=1e-4, rtol=1e-4), "case 2 mismatch vs reference"

    # Case 3: large D -> K-tiled accumulator grid + VPU/XLU layer-2 projection.
    B3, D3 = 64, 2304
    x3 = jax.random.normal(kx3, (B3, D3), jnp.float32)
    w1b, b1b, w2b, b2b = init_params(kp2, D3)
    p3 = prepare_params(w1b, b1b, w2b, b2b, tk_max=1024)
    out3 = jax.block_until_ready(torch_mlp_forward(x3, p3))
    ref3 = _ref_forward(x3, w1b, b1b, w2b, b2b)
    assert out3.shape == (B3, 1)
    assert jnp.allclose(out3, ref3, atol=1e-3, rtol=1e-3), "case 3 mismatch vs reference"

    print("KERNEL_OK")
</pallas_src>

<mosaic_0001>
module attributes {stable_mosaic.version = 11 : i64} {
  func.func @kernel(%arg0: i32, %arg1: i32, %arg2: memref<8x32xf32, #tpu.memory_space<vmem>>, %arg3: memref<32x128xf32, #tpu.memory_space<vmem>>, %arg4: memref<1x128xf32, #tpu.memory_space<vmem>>, %arg5: memref<128x1xf32, #tpu.memory_space<vmem>>, %arg6: memref<1x1xf32, #tpu.memory_space<smem>>, %arg7: memref<8x1xf32, #tpu.memory_space<vmem>>, %arg8: memref<8x128xf32, #tpu.memory_space<vmem>>) attributes {dimension_semantics = [#tpu.dimension_semantics<parallel>, #tpu.dimension_semantics<arbitrary>], iteration_bounds = array<i64: 1, 1>, scalar_prefetch = 0 : i64, scratch_operands = 1 : i64, tpu.core_type = #tpu.core_type<tc>, window_params = [{transform_indices = @transform_0, window_bounds = array<i64: 8, 32>}, {pipeline_mode = #tpu.pipeline_mode<synchronous>, transform_indices = @transform_1, window_bounds = array<i64: 32, 128>}, {pipeline_mode = #tpu.pipeline_mode<synchronous>, transform_indices = @transform_2, window_bounds = array<i64: 1, 128>}, {pipeline_mode = #tpu.pipeline_mode<synchronous>, transform_indices = @transform_3, window_bounds = array<i64: 128, 1>}, {transform_indices = @transform_4, window_bounds = array<i64: 1, 1>}, {transform_indices = @transform_5, window_bounds = array<i64: 8, 1>}]} {
    %c0_i32 = arith.constant 0 : i32
    %0 = arith.cmpi eq, %arg1, %c0_i32 : i32
    %1 = arith.extui %0 : i1 to i32
    %c0_i32_0 = arith.constant 0 : i32
    %2 = arith.cmpi ne, %1, %c0_i32_0 : i32
    scf.if %2 {
      %cst_10 = arith.constant 0.000000e+00 : f32
      %12 = vector.broadcast %cst_10 : f32 to vector<8x128xf32>
      %c0_11 = arith.constant 0 : index
      %c0_12 = arith.constant 0 : index
      %13 = vector.load %arg8[%c0_11, %c0_12] : memref<8x128xf32, #tpu.memory_space<vmem>>, vector<8x128xf32>
      tpu.vector_store %arg8[%c0_11, %c0_12], %12 {strides = array<i32>} : memref<8x128xf32, #tpu.memory_space<vmem>>, vector<8x128xf32>,
    } else {
    }
    %c0 = arith.constant 0 : index
    %c0_1 = arith.constant 0 : index
    %3 = vector.load %arg8[%c0, %c0_1] : memref<8x128xf32, #tpu.memory_space<vmem>>, vector<8x128xf32>
    %c0_2 = arith.constant 0 : index
    %c0_3 = arith.constant 0 : index
    %4 = vector.load %arg2[%c0_2, %c0_3] : memref<8x32xf32, #tpu.memory_space<vmem>>, vector<8x32xf32>
    %c0_4 = arith.constant 0 : index
    %c0_5 = arith.constant 0 : index
    %5 = vector.load %arg3[%c0_4, %c0_5] : memref<32x128xf32, #tpu.memory_space<vmem>>, vector<32x128xf32>
    %cst = arith.constant dense<0.000000e+00> : vector<8x128xf32>
    %6 = tpu.matmul %4, %5, %cst {dimension_numbers = #tpu.dot_dimension_numbers<[1], [0], [0], [1], [0, 0, 1, 1], [], []>} : vector<8x32xf32>, vector<32x128xf32>, vector<8x128xf32> -> vector<8x128xf32>
    %7 = arith.addf %3, %6 : vector<8x128xf32>
    %c0_6 = arith.constant 0 : index
    %c0_7 = arith.constant 0 : index
    %8 = vector.load %arg8[%c0_6, %c0_7] : memref<8x128xf32, #tpu.memory_space<vmem>>, vector<8x128xf32>
    tpu.vector_store %arg8[%c0_6, %c0_7], %7 {strides = array<i32>} : memref<8x128xf32, #tpu.memory_space<vmem>>, vector<8x128xf32>,
    %c0_i32_8 = arith.constant 0 : i32
    %9 = arith.cmpi eq, %arg1, %c0_i32_8 : i32
    %10 = arith.extui %9 : i1 to i32
    %c0_i32_9 = arith.constant 0 : i32
    %11 = arith.cmpi ne, %10, %c0_i32_9 : i32
    scf.if %11 {
      %c0_10 = arith.constant 0 : index
      %c0_11 = arith.constant 0 : index
      %12 = vector.load %arg8[%c0_10, %c0_11] : memref<8x128xf32, #tpu.memory_space<vmem>>, vector<8x128xf32>
      %c0_12 = arith.constant 0 : index
      %c0_13 = arith.constant 0 : index
      %13 = vector.load %arg4[%c0_12, %c0_13] : memref<1x128xf32, #tpu.memory_space<vmem>>, vector<1x128xf32>
      %14 = vector.broadcast %13 : vector<1x128xf32> to vector<8x128xf32>
      %15 = arith.addf %12, %14 : vector<8x128xf32>
      %cst_14 = arith.constant 0.000000e+00 : f32
      %16 = vector.broadcast %cst_14 : f32 to vector<8x128xf32>
      %17 = arith.maximumf %15, %16 : vector<8x128xf32>
      %c0_15 = arith.constant 0 : index
      %c0_16 = arith.constant 0 : index
      %18 = memref.load %arg6[%c0_15, %c0_16] : memref<1x1xf32, #tpu.memory_space<smem>>
      %c0_17 = arith.constant 0 : index
      %c0_18 = arith.constant 0 : index
      %19 = vector.load %arg5[%c0_17, %c0_18] : memref<128x1xf32, #tpu.memory_space<vmem>>, vector<128x1xf32>
      %cst_19 = arith.constant dense<0.000000e+00> : vector<8x1xf32>
      %20 = tpu.matmul %17, %19, %cst_19 {dimension_numbers = #tpu.dot_dimension_numbers<[1], [0], [0], [1], [0, 0, 1, 1], [], []>} : vector<8x128xf32>, vector<128x1xf32>, vector<8x1xf32> -> vector<8x1xf32>
      %21 = vector.broadcast %18 : f32 to vector<8x1xf32>
      %22 = arith.addf %20, %21 : vector<8x1xf32>
      %c0_20 = arith.constant 0 : index
      %c0_21 = arith.constant 0 : index
      %23 = vector.load %arg7[%c0_20, %c0_21] : memref<8x1xf32, #tpu.memory_space<vmem>>, vector<8x1xf32>
      tpu.vector_store %arg7[%c0_20, %c0_21], %22 {strides = array<i32>} : memref<8x1xf32, #tpu.memory_space<vmem>>, vector<8x1xf32>,
    } else {
    }
    return
  }
  func.func @transform_0(%arg0: i32, %arg1: i32) -> (i32, i32) {
    %c0_i32 = arith.constant 0 : i32
    return %arg0, %arg1 : i32, i32
  }
  func.func @transform_1(%arg0: i32, %arg1: i32) -> (i32, i32) {
    %c0_i32 = arith.constant 0 : i32
    %c0_i32_0 = arith.constant 0 : i32
    return %arg1, %c0_i32 : i32, i32
  }
  func.func @transform_2(%arg0: i32, %arg1: i32) -> (i32, i32) {
    %c0_i32 = arith.constant 0 : i32
    %c0_i32_0 = arith.constant 0 : i32
    %c0_i32_1 = arith.constant 0 : i32
    return %c0_i32, %c0_i32_0 : i32, i32
  }
  func.func @transform_3(%arg0: i32, %arg1: i32) -> (i32, i32) {
    %c0_i32 = arith.constant 0 : i32
    %c0_i32_0 = arith.constant 0 : i32
    %c0_i32_1 = arith.constant 0 : i32
    return %c0_i32, %c0_i32_0 : i32, i32
  }
  func.func @transform_4(%arg0: i32, %arg1: i32) -> (i32, i32) {
    %c0_i32 = arith.constant 0 : i32
    %c0_i32_0 = arith.constant 0 : i32
    %c0_i32_1 = arith.constant 0 : i32
    return %c0_i32, %c0_i32_0 : i32, i32
  }
  func.func @transform_5(%arg0: i32, %arg1: i32) -> (i32, i32) {
    %c0_i32 = arith.constant 0 : i32
    %c0_i32_0 = arith.constant 0 : i32
    return %arg0, %c0_i32 : i32, i32
  }
}

</mosaic_0001>

<bundles_post_ra>
// kernel: tpu_custom_call.1
= control target key start
LH: loop header
LB: loop body
LE: loop exit
PB: predicated region body
PF: predicated region fallthrough
CT: control target
= control target key end

     0   :  { %v318_v0 = vmov 0.0|0.0   ;;  %vm319_vm0 = vmmov 0   ;;  %v320_v4 = vmov 0.0   ;;  %vm32_vm1 = vcmask 261120   ;;  %s423_s1 = inlined_call_operand.vmem [shape: f32[32,128], index: 1, kind: input, shape index: {}]   ;;  %s424_s3 = inlined_call_operand.vmem [shape: f32[128,1], index: 3, kind: input, shape index: {}]   ;;  %s425_s0 = inlined_call_operand.vmem [shape: f32[8,32], index: 0, kind: input, shape index: {}]   ;;  %s426_s2 = inlined_call_operand.vmem [shape: f32[1,128], index: 2, kind: input, shape index: {}]   ;;  %s427_s4 = inlined_call_operand.<no memory space> [shape: f32[1,1], index: 4, kind: input, shape index: {}]   ;;  %s428_s5 = inlined_call_operand.vmem [shape: f32[8,1], index: 5, kind: output, shape index: {}]  }
   0x1   :  { %285 = vmatprep.subr.bf16.mxu0 %v318_v0  ;;  %v28_v1 = vld [vmem:[%s423_s1] sm:$0xff]  ;;  %v29_v2 = vld [vmem:[%s423_s1 + $0x8] sm:$0xff]  ;;  %v30_v3 = vld [vmem:[%s423_s1 + $0x10] sm:$0xff]  ;;  %247 = vmatprep.mubr.msk.f32.mxu0 %vm319_vm0, %v320_v4  ;;  %v138_v38 = vstv %s427_s4  ;;  %vm209_vm2 = vcmask 7168  }
   0x2   :  { %v286_v5 = vpack.c.bf16 %v29_v2, %v28_v1  ;;  %v31_v6 = vld [vmem:[%s423_s1 + $0x18] sm:$0xff]  ;;  %291 = vmatprep.subr.bf16.mxu1 %v318_v0  ;;  %v122_v7 = vld [vmem:[%s424_s3] sm:$0xff]  ;;  %282 = vmatprep.mubr.msk.f32.mxu1 %vm319_vm0, %v320_v4  ;;  %v123_v8 = vld [vmem:[%s424_s3 + $0x8] sm:$0xff] }
   0x3   :  { %v124_v9 = vld [vmem:[%s424_s3 + $0x10] sm:$0xff]  ;;  %v125_v10 = vld [vmem:[%s424_s3 + $0x18] sm:$0xff]  ;;  %v289_v11 = vpack.c.bf16 %v31_v6, %v30_v3  ;;  %v292_v12 = vpack.c.bf16 %v123_v8, %v122_v7  ;;  %v126_v14 = vld [vmem:[%s424_s3 + $0x20] sm:$0xff] }
   0x4   :  { %287 = vmatpush3.bf16.msra.mxu0 %v286_v5  ;;  %v295_v13 = vpack.c.bf16 %v125_v10, %v124_v9  ;;  %v127_v15 = vld [vmem:[%s424_s3 + $0x28] sm:$0xff]  ;;  %v27_v16 = vld [vmem:[%s425_s0] sm:$0xff]  ;;  %v128_v18 = vld [vmem:[%s424_s3 + $0x30] sm:$0xff] }
   0x5   :  { %288 = vmatprep.subr.bf16.mxu0 %v318_v0  ;;  %293 = vmatpush3.bf16.msra.mxu1 %v292_v12  ;;  %v298_v17 = vpack.c.bf16 %v127_v15, %v126_v14  ;;  %v129_v19 = vld [vmem:[%s424_s3 + $0x38] sm:$0xff]  ;;  %v130_v21 = vld [vmem:[%s424_s3 + $0x40] sm:$0xff]  ;;  %v131_v22 = vld [vmem:[%s424_s3 + $0x48] sm:$0xff] }
   0x6   :  { %294 = vmatprep.subr.bf16.mxu1 %v318_v0  ;;  %v301_v20 = vpack.c.bf16 %v129_v19, %v128_v18  ;;  %v304_v23 = vpack.c.bf16 %v131_v22, %v130_v21  ;;  %v132_v24 = vld [vmem:[%s424_s3 + $0x50] sm:$0xff]  ;;  %v133_v25 = vld [vmem:[%s424_s3 + $0x58] sm:$0xff]  ;;  %v134_v27 = vld [vmem:[%s424_s3 + $0x60] sm:$0xff] }
   0x7   :  { %v307_v26 = vpack.c.bf16 %v133_v25, %v132_v24  ;;  %v135_v28 = vld [vmem:[%s424_s3 + $0x68] sm:$0xff]  ;;  %v136_v30 = vld [vmem:[%s424_s3 + $0x70] sm:$0xff]  ;;  %v137_v31 = vld [vmem:[%s424_s3 + $0x78] sm:$0xff] }
   0x8   :  { %290 = vmatpush3.bf16.msra.mxu0 %v289_v11  ;;  %v310_v29 = vpack.c.bf16 %v135_v28, %v134_v27  ;;  %v313_v32 = vpack.c.bf16 %v137_v31, %v136_v30  ;;  %v216_v33 = vld [vmem:[%s426_s2] ss:$0 sm:$0xff] }
   0x9   :  { %296 = vmatpush3.bf16.msra.mxu1 %v295_v13 }
   0xa   :  { %297 = vmatprep.subr.bf16.mxu1 %v318_v0 }
   0xb   :  { %248 = vmatmul.mubr.msk.f32.vlgmr.msra.gmra.mrb[0].mxu0 %vm32_vm1, %v27_v16 }
   0xd   :  { %299 = vmatpush3.bf16.msra.mxu1 %v298_v17 }
   0xe   :  { %300 = vmatprep.subr.bf16.mxu1 %v318_v0 }
  0x11   :  { %302 = vmatpush3.bf16.msra.mxu1 %v301_v20 }
  0x12   :  { %303 = vmatprep.subr.bf16.mxu1 %v318_v0 }
  0x15   :  { %305 = vmatpush3.bf16.msra.mxu1 %v304_v23 }
  0x16   :  { %306 = vmatprep.subr.bf16.mxu1 %v318_v0 }
  0x19   :  { %308 = vmatpush3.bf16.msra.mxu1 %v307_v26 }
  0x1a   :  { %309 = vmatprep.subr.bf16.mxu1 %v318_v0 }
  0x1d   :  { %311 = vmatpush3.bf16.msra.mxu1 %v310_v29 }
  0x1e   :  { %312 = vmatprep.subr.bf16.mxu1 %v318_v0 }
  0x21   :  { %314 = vmatpush3.bf16.msra.mxu1 %v313_v32 }
  0xde   :  { %v102_v34 = vpop.f32.mrb[0].mxu0 }
  0xdf   :  { %v119_v35 = vadd.f32 %v216_v33, %v102_v34  ;;  %v249_v36 = vpop.f32.mrb[1].mxu0 }
  0xe1   :  { %v120_v37 = vmax.f32 %v119_v35, 0.0 }
  0xe3   :  { %283 = vmatmul.mubr.f32.vlgmr.msra.gmra.mrb[0].mxu1 %v120_v37 }
 0x1b6   :  { %v205_v39 = vpop.f32.mrb[0].mxu1 }
 0x1b7   :  { %v206_v40 = vadd.f32 %v205_v39, %v138_v38  ;;  %v284_v41 = vpop.f32.mrb[1].mxu1 }
 0x1b9   :  { %210 = vst.msk [vmem:[%s428_s5] sm:$0xff] %vm209_vm2, %v206_v40 }

</bundles_post_ra>
